<compile_context>
chip_gen: v6e
topology: v6e:2x2x1
jax: 0.10.0
libtpu: 0.0.40
codegen_flags: <defaults>
</compile_context>

<pallas_src>
import functools

import jax
import jax.numpy as jnp
from jax import lax
from jax.experimental import pallas as pl
from jax.experimental.pallas import tpu as pltpu

LANE = 128
SUBLANE = 8


def _round_up(x, m):
    return (x + m - 1) // m * m


def _pad2d(a, rows, cols):
    return jnp.pad(a, ((0, rows - a.shape[0]), (0, cols - a.shape[1])))


def _vmem_limit_bytes():
    """Generation-aware scoped-VMEM limit: 3/4 of physical per-core VMEM."""
    cap = None
    try:
        info = pltpu.get_tpu_info()
        for name in ("vmem_capacity_bytes", "vmem_size_bytes", "vmem_bytes"):
            cap = getattr(info, name, None)
            if cap:
                break
    except Exception:
        cap = None
    if not cap:
        cap = 128 * 1024 * 1024  # conservative default (v5e/v6e physical)
    # Leave ~25% headroom for compiler-internal scratch / semaphores (critical on
    # v7x where physical VMEM per TensorCore is only 64 MiB).
    return int(cap) * 3 // 4


# ------------------------------ GCNConv layer 1 ------------------------------

def gcn_conv_kernel(a_ref, z_ref, w_ref, b_ref, h_ref, acc_ref, *, tk, z_resident):
    """One (TM, hidden) row tile of relu((A @ Z) @ W + b), K-accumulated over A cols."""
    k = pl.program_id(1)

    @pl.when(k == 0)
    def _():
        acc_ref[...] = jnp.zeros_like(acc_ref)

    # Aggregate first: the contraction width is the (narrow) feature dim of Z.
    if z_resident:
        z = z_ref[pl.ds(pl.multiple_of(k * tk, tk), tk), :]   # Z stays VMEM-resident
    else:
        z = z_ref[...]                                         # streamed (tk, feat) block
    acc_ref[...] += jnp.dot(a_ref[...], z, preferred_element_type=jnp.float32)

    @pl.when(k == pl.num_programs(1) - 1)
    def _():
        # Transform + bias + ReLU once per row tile (hoisted out of the K loop).
        # bf16 inputs / f32 accumulate is the native MXU fast path.
        h = jnp.dot(acc_ref[...].astype(jnp.bfloat16), w_ref[...],
                    preferred_element_type=jnp.float32) + b_ref[...]
        # NOTE: padded node rows come out as relu(b) (non-zero). That is harmless:
        # the corresponding A_hat columns and pool columns are zero-padded, so those
        # rows never contribute downstream.
        h_ref[...] = jnp.maximum(h, 0.0).astype(h_ref.dtype)


def gcn_conv(a_hat, z, w, b, *, tm, tk, vmem_limit, z_resident):
    # TODO(synk): for real sparse graphs, replace the dense A_hat stream with a
    # scalar-prefetched block-sparse index_map that skips all-zero A blocks.
    n = a_hat.shape[0]
    f_in = z.shape[1]
    f_out = w.shape[1]
    assert n % tm == 0 and n % tk == 0
    if z_resident:
        z_spec = pl.BlockSpec((n, f_in), lambda i, k: (0, 0))      # VMEM resident
    else:
        z_spec = pl.BlockSpec((tk, f_in), lambda i, k: (k, 0))     # streamed per K block
    return pl.pallas_call(
        functools.partial(gcn_conv_kernel, tk=tk, z_resident=z_resident),
        out_shape=jax.ShapeDtypeStruct((n, f_out), jnp.bfloat16),
        grid_spec=pltpu.PrefetchScalarGridSpec(
            num_scalar_prefetch=0,
            grid=(n // tm, n // tk),
            in_specs=[
                # A tile (streamed bf16). TODO(synk): on v7x consider
                # pipeline_mode=pl.Buffered(3) to cover the faster HBM.
                pl.BlockSpec((tm, tk), lambda i, k: (i, k)),
                z_spec,
                pl.BlockSpec((f_in, f_out), lambda i, k: (0, 0)),  # W (bf16, resident)
                pl.BlockSpec((1, f_out), lambda i, k: (0, 0)),     # b (f32, resident)
            ],
            out_specs=pl.BlockSpec((tm, f_out), lambda i, k: (i, 0)),
            scratch_shapes=[pltpu.VMEM((tm, f_in), jnp.float32)],
        ),
        compiler_params=pltpu.CompilerParams(
            dimension_semantics=("parallel", "arbitrary"),
            vmem_limit_bytes=vmem_limit,
        ),
    )(a_hat, z, w, b)


# --------- GCNConv layer 2 fused with mean-pool + Linear + log_softmax -------

def gcn_pool_head_kernel(a_ref, z_ref, w_ref, b_ref, p_ref, wf_ref, bf_ref,
                         out_ref, acc_ref, pooled_ref, *, tk, z_resident, num_classes):
    i = pl.program_id(0)
    k = pl.program_id(1)
    last_i = pl.num_programs(0) - 1
    last_k = pl.num_programs(1) - 1

    @pl.when(jnp.logical_and(i == 0, k == 0))
    def _():
        pooled_ref[...] = jnp.zeros_like(pooled_ref)

    @pl.when(k == 0)
    def _():
        acc_ref[...] = jnp.zeros_like(acc_ref)

    if z_resident:
        z = z_ref[pl.ds(pl.multiple_of(k * tk, tk), tk), :]
    else:
        z = z_ref[...]
    acc_ref[...] += jnp.dot(a_ref[...], z, preferred_element_type=jnp.float32)

    @pl.when(k == last_k)
    def _():
        # Finish this row tile of H2 = relu((A@H1)@W2 + b2) and immediately fold it
        # into the pooled accumulator -> H2 never touches HBM.
        h = jnp.dot(acc_ref[...].astype(jnp.bfloat16), w_ref[...],
                    preferred_element_type=jnp.float32) + b_ref[...]
        h = jnp.maximum(h, 0.0)
        pooled_ref[...] += jnp.dot(p_ref[...], h.astype(jnp.bfloat16),
                                   preferred_element_type=jnp.float32)

    @pl.when(jnp.logical_and(i == last_i, k == last_k))
    def _():
        logits = jnp.dot(pooled_ref[...].astype(jnp.bfloat16), wf_ref[...],
                         preferred_element_type=jnp.float32) + bf_ref[...]
        # Mask lane-padding class columns out of the softmax.
        col = lax.broadcasted_iota(jnp.int32, logits.shape, 1)
        logits = jnp.where(col < num_classes, logits, jnp.float32(-1e30))
        m = jnp.max(logits, axis=1, keepdims=True)
        zc = logits - m
        lse = jnp.log(jnp.sum(jnp.exp(zc), axis=1, keepdims=True))
        out_ref[...] = (zc - lse).astype(out_ref.dtype)


def gcn_conv_pool_head(a_hat, z, w, b, pool, w_fc, b_fc, num_classes, *,
                       tm, tk, vmem_limit, z_resident):
    n = a_hat.shape[0]
    f_in = z.shape[1]
    f_out = w.shape[1]
    g_pad = pool.shape[0]
    c_pad = w_fc.shape[1]
    assert n % tm == 0 and n % tk == 0
    if z_resident:
        z_spec = pl.BlockSpec((n, f_in), lambda i, k: (0, 0))
    else:
        z_spec = pl.BlockSpec((tk, f_in), lambda i, k: (k, 0))
    return pl.pallas_call(
        functools.partial(gcn_pool_head_kernel, tk=tk, z_resident=z_resident,
                          num_classes=num_classes),
        out_shape=jax.ShapeDtypeStruct((g_pad, c_pad), jnp.float32),
        grid_spec=pltpu.PrefetchScalarGridSpec(
            num_scalar_prefetch=0,
            grid=(n // tm, n // tk),
            in_specs=[
                pl.BlockSpec((tm, tk), lambda i, k: (i, k)),        # A tile (streamed)
                z_spec,                                             # H1
                pl.BlockSpec((f_in, f_out), lambda i, k: (0, 0)),   # W2 (bf16, resident)
                pl.BlockSpec((1, f_out), lambda i, k: (0, 0)),      # b2 (f32, resident)
                pl.BlockSpec((g_pad, tm), lambda i, k: (0, i)),     # pool cols of row tile
                pl.BlockSpec((f_out, c_pad), lambda i, k: (0, 0)),  # FC weight (resident)
                pl.BlockSpec((1, c_pad), lambda i, k: (0, 0)),      # FC bias (resident)
            ],
            out_specs=pl.BlockSpec((g_pad, c_pad), lambda i, k: (0, 0)),
            scratch_shapes=[pltpu.VMEM((tm, f_out), jnp.float32),
                            pltpu.VMEM((g_pad, f_out), jnp.float32)],
        ),
        compiler_params=pltpu.CompilerParams(
            # Both the row-tile axis (feeds the pooled accumulator) and the K axis
            # reduce into resident state -> both arbitrary (serial).
            dimension_semantics=("arbitrary", "arbitrary"),
            vmem_limit_bytes=vmem_limit,
        ),
    )(a_hat, z, w, b, pool, w_fc, b_fc)


# ------------------------------- full forward -------------------------------

def gcn_forward(a_hat, x, w1, b1, w2, b2, pool, w_fc, b_fc, *,
                tm=512, tk=512, max_resident_z_bytes=None):
    n = a_hat.shape[0]
    g = pool.shape[0]
    num_classes = w_fc.shape[1]
    vmem_limit = _vmem_limit_bytes()

    # Clamp the (large) default tiles to the 128-aligned node count so small graphs
    # don't over-pad; 512-multiples keep big graphs near HBM roofline and fill the
    # v6e/v7x 256x256 MXU. (On v7x prefer tm=tk=1024 and keep n_pad/tm >= 2 so the
    # parallel row-tile axis of layer 1 can shard across both TensorCores.)
    assert tm % LANE == 0 and tk % LANE == 0
    tm = min(tm, _round_up(n, LANE))
    tk = min(tk, _round_up(n, LANE))
    assert max(tm, tk) % min(tm, tk) == 0

    n_pad = _round_up(n, max(tm, tk))
    f_in_p = _round_up(x.shape[1], LANE)
    hid_p = _round_up(w1.shape[1], LANE)
    cls_p = _round_up(num_classes, LANE)
    g_p = _round_up(g, SUBLANE)

    # Streamed operands in bf16 (kernels are HBM-bound on them); all accumulation f32.
    a_p = _pad2d(a_hat, n_pad, n_pad).astype(jnp.bfloat16)
    x_p = _pad2d(x, n_pad, f_in_p).astype(jnp.bfloat16)
    pool_p = _pad2d(pool, g_p, n_pad).astype(jnp.bfloat16)
    # Weights in bf16 (MXU-native fast path, halves resident bytes); biases stay f32.
    w1_p = _pad2d(w1, f_in_p, hid_p).astype(jnp.bfloat16)
    b1_p = _pad2d(b1, 1, hid_p).astype(jnp.float32)
    w2_p = _pad2d(w2, hid_p, hid_p).astype(jnp.bfloat16)
    b2_p = _pad2d(b2, 1, hid_p).astype(jnp.float32)
    wf_p = _pad2d(w_fc, hid_p, cls_p).astype(jnp.bfloat16)
    bf_p = _pad2d(b_fc, 1, cls_p).astype(jnp.float32)

    # Keep the K-streamed activation operand fully VMEM-resident when it fits (avoids
    # re-DMAing it once per row tile); otherwise stream a (tk, feat) block per K step.
    if max_resident_z_bytes is None:
        max_resident_z_bytes = vmem_limit // 4
    z1_resident = n_pad * f_in_p * 2 <= max_resident_z_bytes
    z2_resident = n_pad * hid_p * 2 <= max_resident_z_bytes

    h1 = gcn_conv(a_p, x_p, w1_p, b1_p, tm=tm, tk=tk,
                  vmem_limit=vmem_limit, z_resident=z1_resident)     # (n_pad, hid_p) bf16
    out = gcn_conv_pool_head(a_p, h1, w2_p, b2_p, pool_p, wf_p, bf_p, num_classes,
                             tm=tm, tk=tk, vmem_limit=vmem_limit,
                             z_resident=z2_resident)                 # (g_p, cls_p) f32
    return out[:g, :num_classes]


# -------------------------- plain-JAX glue / reference ----------------------

def build_normalized_adjacency(edge_index, num_nodes):
    """PyG GCNConv normalization: A_hat = D^{-1/2} (A + I) D^{-1/2}."""
    src, dst = edge_index
    a = jnp.zeros((num_nodes, num_nodes), jnp.float32)
    a = a.at[dst, src].add(1.0)                           # message flows src -> dst
    a = a + jnp.eye(num_nodes, dtype=jnp.float32)         # self-loops
    deg = jnp.sum(a, axis=1)
    d_inv_sqrt = jnp.where(deg > 0, 1.0 / jnp.sqrt(deg), 0.0)
    return d_inv_sqrt[:, None] * a * d_inv_sqrt[None, :]


def build_mean_pool(batch, num_graphs, num_nodes):
    onehot = (batch[None, :] == jnp.arange(num_graphs)[:, None]).astype(jnp.float32)
    counts = jnp.sum(onehot, axis=1, keepdims=True)
    return onehot / jnp.maximum(counts, 1.0)


def gcn_reference(a_hat, x, w1, b1, w2, b2, pool, w_fc, b_fc):
    h1 = jnp.maximum((a_hat @ x) @ w1 + b1, 0.0)
    h2 = jnp.maximum((a_hat @ h1) @ w2 + b2, 0.0)
    logits = (pool @ h2) @ w_fc + b_fc
    return jax.nn.log_softmax(logits, axis=1)


if __name__ == "__main__":
    # 2 ring graphs of 96 nodes each (N=192, padded to 256); input 8, hidden 32, 4 classes.
    NODES_PER_GRAPH = 96
    G = 2
    N = G * NODES_PER_GRAPH
    INPUT_DIM, HIDDEN_DIM, OUTPUT_DIM = 8, 32, 4

    key = jax.random.PRNGKey(0)
    k_x, k_w1, k_b1, k_w2, k_b2, k_wf, k_bf = jax.random.split(key, 7)

    x = jax.random.normal(k_x, (N, INPUT_DIM), dtype=jnp.float32)

    src_list, dst_list = [], []
    for g in range(G):
        base = g * NODES_PER_GRAPH
        for i in range(NODES_PER_GRAPH):
            a_node, b_node = base + i, base + (i + 1) % NODES_PER_GRAPH
            src_list += [a_node, b_node]
            dst_list += [b_node, a_node]
    edge_index = jnp.array([src_list, dst_list], dtype=jnp.int32)
    batch = jnp.repeat(jnp.arange(G, dtype=jnp.int32), NODES_PER_GRAPH)

    w1 = 0.1 * jax.random.normal(k_w1, (INPUT_DIM, HIDDEN_DIM), dtype=jnp.float32)
    b1 = 0.1 * jax.random.normal(k_b1, (1, HIDDEN_DIM), dtype=jnp.float32)
    w2 = 0.1 * jax.random.normal(k_w2, (HIDDEN_DIM, HIDDEN_DIM), dtype=jnp.float32)
    b2 = 0.1 * jax.random.normal(k_b2, (1, HIDDEN_DIM), dtype=jnp.float32)
    w_fc = 0.1 * jax.random.normal(k_wf, (HIDDEN_DIM, OUTPUT_DIM), dtype=jnp.float32)
    b_fc = 0.1 * jax.random.normal(k_bf, (1, OUTPUT_DIM), dtype=jnp.float32)

    a_hat = build_normalized_adjacency(edge_index, N)
    pool = build_mean_pool(batch, G, N)

    ref = gcn_reference(a_hat, x, w1, b1, w2, b2, pool, w_fc, b_fc)

    # Exercise: (1) large default tiles with resident Z (single-tile grid here),
    # (2) multi-tile grid with resident Z, (3) multi-tile grid with streamed Z.
    configs = [
        dict(),
        dict(tm=128, tk=128),
        dict(tm=128, tk=128, max_resident_z_bytes=0),
    ]
    for cfg in configs:
        out = gcn_forward(a_hat, x, w1, b1, w2, b2, pool, w_fc, b_fc, **cfg)
        out = jax.block_until_ready(out)

        assert out.shape == (G, OUTPUT_DIM)
        assert bool(jnp.all(jnp.isfinite(out)))
        # log_softmax rows exponentiate to probabilities summing to 1
        assert bool(jnp.allclose(jnp.sum(jnp.exp(out), axis=1), 1.0, atol=1e-4))
        # matches the f32 reference within bf16 streaming tolerance
        assert bool(jnp.allclose(out, ref, atol=3e-2, rtol=3e-2))

    print("KERNEL_OK")
</pallas_src>

<mosaic_0001>
module attributes {stable_mosaic.version = 11 : i64} {
  func.func @gcn_conv_kernel(%arg0: i32, %arg1: i32, %arg2: memref<256x256xbf16, #tpu.memory_space<vmem>>, %arg3: memref<256x128xbf16, #tpu.memory_space<vmem>>, %arg4: memref<128x128xbf16, #tpu.memory_space<vmem>>, %arg5: memref<1x128xf32, #tpu.memory_space<vmem>>, %arg6: memref<256x128xbf16, #tpu.memory_space<vmem>>, %arg7: memref<256x128xf32, #tpu.memory_space<vmem>>) attributes {dimension_semantics = [#tpu.dimension_semantics<parallel>, #tpu.dimension_semantics<arbitrary>], iteration_bounds = array<i64: 1, 1>, scalar_prefetch = 0 : i64, scratch_operands = 1 : i64, tpu.core_type = #tpu.core_type<tc>, window_params = [{transform_indices = @transform_0, window_bounds = array<i64: 256, 256>}, {pipeline_mode = #tpu.pipeline_mode<synchronous>, transform_indices = @transform_1, window_bounds = array<i64: 256, 128>}, {pipeline_mode = #tpu.pipeline_mode<synchronous>, transform_indices = @transform_2, window_bounds = array<i64: 128, 128>}, {pipeline_mode = #tpu.pipeline_mode<synchronous>, transform_indices = @transform_3, window_bounds = array<i64: 1, 128>}, {transform_indices = @transform_4, window_bounds = array<i64: 256, 128>}]} {
    %c0_i32 = arith.constant 0 : i32
    %0 = arith.cmpi eq, %arg1, %c0_i32 : i32
    %1 = arith.extui %0 : i1 to i32
    %c0_i32_0 = arith.constant 0 : i32
    %2 = arith.cmpi ne, %1, %c0_i32_0 : i32
    scf.if %2 {
      %cst_9 = arith.constant 0.000000e+00 : f32
      %15 = vector.broadcast %cst_9 : f32 to vector<256x128xf32>
      %c0_10 = arith.constant 0 : index
      %c0_11 = arith.constant 0 : index
      %16 = vector.load %arg7[%c0_10, %c0_11] : memref<256x128xf32, #tpu.memory_space<vmem>>, vector<256x128xf32>
      tpu.vector_store %arg7[%c0_10, %c0_11], %15 {strides = array<i32>} : memref<256x128xf32, #tpu.memory_space<vmem>>, vector<256x128xf32>,
    } else {
    }
    %c256_i32 = arith.constant 256 : i32
    %3 = arith.muli %arg1, %c256_i32 : i32
    %4 = tpu.assume_multiple %3, 256 : i32
    %5 = arith.index_cast %4 : i32 to index
    %c0 = arith.constant 0 : index
    %6 = vector.load %arg3[%5, %c0] : memref<256x128xbf16, #tpu.memory_space<vmem>>, vector<256x128xbf16>
    %c0_1 = arith.constant 0 : index
    %c0_2 = arith.constant 0 : index
    %7 = vector.load %arg7[%c0_1, %c0_2] : memref<256x128xf32, #tpu.memory_space<vmem>>, vector<256x128xf32>
    %c0_3 = arith.constant 0 : index
    %c0_4 = arith.constant 0 : index
    %8 = vector.load %arg2[%c0_3, %c0_4] : memref<256x256xbf16, #tpu.memory_space<vmem>>, vector<256x256xbf16>
    %cst = arith.constant dense<0.000000e+00> : vector<256x128xf32>
    %9 = tpu.matmul %8, %6, %cst {dimension_numbers = #tpu.dot_dimension_numbers<[1], [0], [0], [1], [0, 0, 1, 1], [], []>} : vector<256x256xbf16>, vector<256x128xbf16>, vector<256x128xf32> -> vector<256x128xf32>
    %10 = arith.addf %7, %9 : vector<256x128xf32>
    %c0_5 = arith.constant 0 : index
    %c0_6 = arith.constant 0 : index
    %11 = vector.load %arg7[%c0_5, %c0_6] : memref<256x128xf32, #tpu.memory_space<vmem>>, vector<256x128xf32>
    tpu.vector_store %arg7[%c0_5, %c0_6], %10 {strides = array<i32>} : memref<256x128xf32, #tpu.memory_space<vmem>>, vector<256x128xf32>,
    %c0_i32_7 = arith.constant 0 : i32
    %12 = arith.cmpi eq, %arg1, %c0_i32_7 : i32
    %13 = arith.extui %12 : i1 to i32
    %c0_i32_8 = arith.constant 0 : i32
    %14 = arith.cmpi ne, %13, %c0_i32_8 : i32
    scf.if %14 {
      %c0_9 = arith.constant 0 : index
      %c0_10 = arith.constant 0 : index
      %15 = vector.load %arg7[%c0_9, %c0_10] : memref<256x128xf32, #tpu.memory_space<vmem>>, vector<256x128xf32>
      %16 = arith.truncf %15 : vector<256x128xf32> to vector<256x128xbf16>
      %c0_11 = arith.constant 0 : index
      %c0_12 = arith.constant 0 : index
      %17 = vector.load %arg4[%c0_11, %c0_12] : memref<128x128xbf16, #tpu.memory_space<vmem>>, vector<128x128xbf16>
      %cst_13 = arith.constant dense<0.000000e+00> : vector<256x128xf32>
      %18 = tpu.matmul %16, %17, %cst_13 {dimension_numbers = #tpu.dot_dimension_numbers<[1], [0], [0], [1], [0, 0, 1, 1], [], []>} : vector<256x128xbf16>, vector<128x128xbf16>, vector<256x128xf32> -> vector<256x128xf32>
      %c0_14 = arith.constant 0 : index
      %c0_15 = arith.constant 0 : index
      %19 = vector.load %arg5[%c0_14, %c0_15] : memref<1x128xf32, #tpu.memory_space<vmem>>, vector<1x128xf32>
      %20 = vector.broadcast %19 : vector<1x128xf32> to vector<256x128xf32>
      %21 = arith.addf %18, %20 : vector<256x128xf32>
      %cst_16 = arith.constant 0.000000e+00 : f32
      %22 = vector.broadcast %cst_16 : f32 to vector<256x128xf32>
      %23 = arith.maximumf %21, %22 : vector<256x128xf32>
      %24 = arith.truncf %23 : vector<256x128xf32> to vector<256x128xbf16>
      %c0_17 = arith.constant 0 : index
      %c0_18 = arith.constant 0 : index
      %25 = vector.load %arg6[%c0_17, %c0_18] : memref<256x128xbf16, #tpu.memory_space<vmem>>, vector<256x128xbf16>
      tpu.vector_store %arg6[%c0_17, %c0_18], %24 {strides = array<i32>} : memref<256x128xbf16, #tpu.memory_space<vmem>>, vector<256x128xbf16>,
    } else {
    }
    return
  }
  func.func @transform_0(%arg0: i32, %arg1: i32) -> (i32, i32) {
    %c0_i32 = arith.constant 0 : i32
    return %arg0, %arg1 : i32, i32
  }
  func.func @transform_1(%arg0: i32, %arg1: i32) -> (i32, i32) {
    %c0_i32 = arith.constant 0 : i32
    %c0_i32_0 = arith.constant 0 : i32
    %c0_i32_1 = arith.constant 0 : i32
    return %c0_i32, %c0_i32_0 : i32, i32
  }
  func.func @transform_2(%arg0: i32, %arg1: i32) -> (i32, i32) {
    %c0_i32 = arith.constant 0 : i32
    %c0_i32_0 = arith.constant 0 : i32
    %c0_i32_1 = arith.constant 0 : i32
    return %c0_i32, %c0_i32_0 : i32, i32
  }
  func.func @transform_3(%arg0: i32, %arg1: i32) -> (i32, i32) {
    %c0_i32 = arith.constant 0 : i32
    %c0_i32_0 = arith.constant 0 : i32
    %c0_i32_1 = arith.constant 0 : i32
    return %c0_i32, %c0_i32_0 : i32, i32
  }
  func.func @transform_4(%arg0: i32, %arg1: i32) -> (i32, i32) {
    %c0_i32 = arith.constant 0 : i32
    %c0_i32_0 = arith.constant 0 : i32
    return %arg0, %c0_i32 : i32, i32
  }
}

</mosaic_0001>

<bundles_post_ra>
// kernel: tpu_custom_call.1
= control target key start
LH: loop header
LB: loop body
LE: loop exit
PB: predicated region body
PF: predicated region fallthrough
CT: control target
= control target key end

     0   :  { %9 = vsyncpa [#allocation4], 0  ;;  %s1846_s0 = inlined_call_operand.hbm [shape: bf16[256,256], index: 0, kind: input, shape index: {}]   ;;  %s1847_s1 = inlined_call_operand.hbm [shape: bf16[256,128], index: 1, kind: input, shape index: {}]   ;;  %s1848_s2 = inlined_call_operand.hbm [shape: bf16[128,128], index: 2, kind: input, shape index: {}]   ;;  %s1849_s3 = inlined_call_operand.vmem [shape: f32[1,128], index: 3, kind: input, shape index: {}]   ;;  %s1850_s4 = inlined_call_operand.hbm [shape: bf16[256,128], index: 4, kind: output, shape index: {}]  }
   0x1   :  { %10 = vsyncpa [#allocation7], 0 }
   0x2   :  { %11 = vsyncpa [#allocation5], 0  ;;  %s1755_s15 = smov [#allocation6]  }
   0x3   :  { %s29_s16 = sshll.u32 %s1755_s15, 4  ;;  %s30_s16 = int_to_ptr.vmem [resolvable:$true] %s29_s16 }
   0x4   :  { %s1677_s17 = scalar_lea.vmem %s30_s16, 2048  ;;  %p1682_p1 = scmp.lt.s32.totalorder %s30_s16, %s30_s16 }
   0x5   :  { %p1678_p0 = scmp.ne.s32.totalorder %s30_s16, %s1677_s17  ;;  %p1683_p2 = scmp.lt.s32.totalorder %s1677_s17, %s1677_s17 }
   0x7   :  { %p1684_p3 = por %p1683_p2, %p1682_p1 }
   0x9   :  { %p1685_p4 = pnand %p1684_p3, %p1678_p0 }
   0xb   :  { %1688 = shalt.err (!%p1685_p4)
}
   0xc   :  { %s1756_s18 = smov 64   ;;  %s1757_s19 = smov 4  }
   0xd   :  { %35 = dma.hbm_to_vmem [thread:$0]  %s1847_s1, 2048, %s30_s16, [#allocation7], %s1756_s18, %s1756_s18, %s1757_s19  }
   0xe   :  { %s1758_s22 = smov [#allocation3]  }
   0xf   :  { %s17_s23 = sshll.u32 %s1758_s22, 4  ;;  %s18_s23 = int_to_ptr.vmem [resolvable:$true] %s17_s23 }
  0x10   :  { %s1697_s24 = scalar_lea.vmem %s18_s23, 4096  ;;  %p1702_p6 = scmp.lt.s32.totalorder %s18_s23, %s18_s23 }
  0x11   :  { %p1698_p5 = scmp.ne.s32.totalorder %s18_s23, %s1697_s24  ;;  %p1703_p7 = scmp.lt.s32.totalorder %s1697_s24, %s1697_s24 }
  0x13   :  { %p1704_p8 = por %p1703_p7, %p1702_p6 }
  0x15   :  { %p1705_p9 = pnand %p1704_p8, %p1698_p5 }
  0x17   :  { %1708 = shalt.err (!%p1705_p9)
}
  0x18   :  { %s1759_s25 = smov 128   ;;  %s1760_s26 = smov 8  }
  0x19   :  { %23 = dma.hbm_to_vmem [thread:$0]  %s1846_s0, 4096, %s18_s23, [#allocation4], %s1759_s25, %s1759_s25, %s1760_s26  }
  0x1a   :  { %s1761_s29 = smov [#allocation8]  }
  0x1b   :  { %s41_s30 = sshll.u32 %s1761_s29, 4  ;;  %s42_s30 = int_to_ptr.vmem [resolvable:$true] %s41_s30 }
  0x1c   :  { %s1717_s1 = scalar_lea.vmem %s42_s30, 1024  ;;  %p1722_p11 = scmp.lt.s32.totalorder %s42_s30, %s42_s30 }
  0x1d   :  { %p1718_p10 = scmp.ne.s32.totalorder %s42_s30, %s1717_s1  ;;  %p1723_p12 = scmp.lt.s32.totalorder %s1717_s1, %s1717_s1 }
  0x1f   :  { %p1724_p13 = por %p1723_p12, %p1722_p11 }
  0x21   :  { %p1725_p0 = pnand %p1724_p13, %p1718_p10 }
  0x23   :  { %1728 = shalt.err (!%p1725_p0)
}
  0x24   :  { %47 = dma.hbm_to_vmem [thread:$0]  %s1848_s2, 1024, %s42_s30, [#allocation7], %s1756_s18, %s1756_s18, %s1757_s19  }
  0x25   :  { %1749 = dma.done.wait [#allocation4], 4096  }
  0x26   :  { %1750 = vsyncadd [#allocation4], 4294963200 }
  0x27   :  { %1751 = dma.done.wait [#allocation7], 3072  }
  0x28   :  { %1752 = vsyncadd [#allocation7], 4294964224  ;;  %v1597_v0 = vld [vmem:[#allocation6 + $0x78] sm:$0xff]   ;;  %v1599_v2 = vld [vmem:[#allocation6 + $0x70] sm:$0xff]  }
  0x29   :  { %v1598_v1 = vld [vmem:[#allocation6 + $0x38] sm:$0xff]   ;;  %1389 = vmatprep.subr.bf16.mxu0 %v1597_v0  ;;  %1573 = vmatprep.subr.bf16.mxu1 %v1597_v0  ;;  %v1600_v3 = vld [vmem:[#allocation6 + $0x30] sm:$0xff]   ;;  %v1601_v4 = vld [vmem:[#allocation6 + $0x68] sm:$0xff]  }
  0x2a   :  { %1390 = vmatpush3.bf16.msra.mxu0 %v1598_v1  ;;  %1581 = vmatpush3.bf16.msra.mxu1 %v1598_v1  ;;  %v1602_v5 = vld [vmem:[#allocation6 + $0x28] sm:$0xff]   ;;  %v1603_v6 = vld [vmem:[#allocation6 + $0x60] sm:$0xff]   ;;  %v1605_v8 = vld [vmem:[#allocation6 + $0x58] sm:$0xff]  }
  0x2b   :  { %1391 = vmatprep.subr.bf16.mxu0 %v1599_v2  ;;  %1574 = vmatprep.subr.bf16.mxu1 %v1599_v2  ;;  %v1604_v7 = vld [vmem:[#allocation6 + $0x20] sm:$0xff]   ;;  %v1606_v9 = vld [vmem:[#allocation6 + $0x18] sm:$0xff]   ;;  %v1607_v10 = vld [vmem:[#allocation6 + $0x50] sm:$0xff]  }
  0x2c   :  { %v1615_v11 = vld [vmem:[#allocation3 + $0x4] ss:$8 sps:$4 sm:$0xff]   ;;  %v1608_v12 = vld [vmem:[#allocation6 + $0x10] sm:$0xff]   ;;  %v1613_v17 = vld [vmem:[#allocation3] ss:$8 sps:$4 sm:$0xff]  }
  0x2d   :  { %485 = vmatprep.mubr.bf16.mxu0 %v1615_v11  ;;  %v1609_v13 = vld [vmem:[#allocation6 + $0x48] sm:$0xff]   ;;  %v1611_v15 = vld [vmem:[#allocation6 + $0x40] sm:$0xff]   ;;  %v1616_v19 = vld [vmem:[#allocation3 + $0x14] ss:$8 sps:$4 sm:$0xff]  }
  0x2e   :  { %1392 = vmatpush3.bf16.msra.mxu0 %v1600_v3  ;;  %1582 = vmatpush3.bf16.msra.mxu1 %v1600_v3  ;;  %v1610_v14 = vld [vmem:[#allocation6 + $0x8] sm:$0xff]   ;;  %v1612_v16 = vld [vmem:[#allocation6] sm:$0xff]   ;;  %v1649_v21 = vld [vmem:[#allocation3 + $0xd4] ss:$8 sps:$4 sm:$0xff]  }
  0x2f   :  { %1393 = vmatprep.subr.bf16.mxu0 %v1601_v4  ;;  %1575 = vmatprep.subr.bf16.mxu1 %v1601_v4  ;;  %v1645_v18 = vld [vmem:[#allocation3 + $0xc4] ss:$8 sps:$4 sm:$0xff]   ;;  %v1643_v20 = vld [vmem:[#allocation3 + $0xc0] ss:$8 sps:$4 sm:$0xff]   ;;  %v1618_v22 = vld [vmem:[#allocation3 + $0x10] ss:$8 sps:$4 sm:$0xff]  }
  0x30   :  { %581 = vmatprep.mubr.bf16.mxu1 %v1645_v18  ;;  %v1619_v23 = vld [vmem:[#allocation3 + $0x24] ss:$8 sps:$4 sm:$0xff]   ;;  %v1651_v24 = vld [vmem:[#allocation3 + $0xd0] ss:$8 sps:$4 sm:$0xff]   ;;  %v1621_v29 = vld [vmem:[#allocation3 + $0x20] ss:$8 sps:$4 sm:$0xff]  }
  0x31   :  { %v1661_v25 = vld [vmem:[#allocation8 + $0x38] sm:$0xff]   ;;  %v1662_v26 = vld [vmem:[#allocation8 + $0x30] sm:$0xff]   ;;  %v1655_v27 = vld [vmem:[#allocation3 + $0xe4] ss:$8 sps:$4 sm:$0xff]  }
  0x32   :  { %1394 = vmatpush3.bf16.msra.mxu0 %v1602_v5  ;;  %1583 = vmatpush3.bf16.msra.mxu1 %v1602_v5  ;;  %v1663_v28 = vld [vmem:[#allocation8 + $0x28] sm:$0xff]   ;;  %v1664_v30 = vld [vmem:[#allocation8 + $0x20] sm:$0xff]   ;;  %v1622_v31 = vld [vmem:[#allocation3 + $0x34] ss:$8 sps:$4 sm:$0xff]  }
  0x33   :  { %1395 = vmatprep.subr.bf16.mxu0 %v1603_v6  ;;  %1576 = vmatprep.subr.bf16.mxu1 %v1603_v6  ;;  %v1657_v32 = vld [vmem:[#allocation3 + $0xe0] ss:$8 sps:$4 sm:$0xff]   ;;  %v1658_v33 = vld [vmem:[#allocation3 + $0xf4] ss:$8 sps:$4 sm:$0xff]   ;;  %v1624_v34 = vld [vmem:[#allocation3 + $0x30] ss:$8 sps:$4 sm:$0xff]  }
  0x34   :  { %v1625_v35 = vld [vmem:[#allocation3 + $0x44] ss:$8 sps:$4 sm:$0xff]   ;;  %v1660_v36 = vld [vmem:[#allocation3 + $0xf0] ss:$8 sps:$4 sm:$0xff]   ;;  %v1627_v37 = vld [vmem:[#allocation3 + $0x40] ss:$8 sps:$4 sm:$0xff]  }
  0x35   :  { %v1628_v38 = vld [vmem:[#allocation3 + $0x54] ss:$8 sps:$4 sm:$0xff]   ;;  %v1630_v39 = vld [vmem:[#allocation3 + $0x50] ss:$8 sps:$4 sm:$0xff]   ;;  %v1631_v40 = vld [vmem:[#allocation3 + $0x64] ss:$8 sps:$4 sm:$0xff]  }
  0x36   :  { %1396 = vmatpush3.bf16.msra.mxu0 %v1604_v7  ;;  %1584 = vmatpush3.bf16.msra.mxu1 %v1604_v7  ;;  %v1633_v41 = vld [vmem:[#allocation3 + $0x60] ss:$8 sps:$4 sm:$0xff]   ;;  %v1634_v42 = vld [vmem:[#allocation3 + $0x74] ss:$8 sps:$4 sm:$0xff]   ;;  %v1636_v43 = vld [vmem:[#allocation3 + $0x70] ss:$8 sps:$4 sm:$0xff]  }
  0x37   :  { %1397 = vmatprep.subr.bf16.mxu0 %v1605_v8  ;;  %1577 = vmatprep.subr.bf16.mxu1 %v1605_v8  ;;  %v1637_v44 = vld [vmem:[#allocation3 + $0x84] ss:$8 sps:$4 sm:$0xff]   ;;  %v1639_v45 = vld [vmem:[#allocation3 + $0x80] ss:$8 sps:$4 sm:$0xff]   ;;  %v1640_v46 = vld [vmem:[#allocation3 + $0x94] ss:$8 sps:$4 sm:$0xff]  }
  0x38   :  { %v1665_v47 = vld [vmem:[#allocation8 + $0x18] sm:$0xff]   ;;  %v1646_v49 = vld [vmem:[#allocation3 + $0xa4] ss:$8 sps:$4 sm:$0xff]   ;;  %v1666_v50 = vld [vmem:[#allocation8 + $0x10] sm:$0xff]  }
  0x39   :  { %v1642_v48 = vld [vmem:[#allocation3 + $0x90] ss:$8 sps:$4 sm:$0xff]   ;;  %v1667_v51 = vld [vmem:[#allocation8 + $0x8] sm:$0xff]   ;;  %v1652_v53 = vld [vmem:[#allocation3 + $0xb4] ss:$8 sps:$4 sm:$0xff]  }
  0x3a   :  { %1398 = vmatpush3.bf16.msra.mxu0 %v1606_v9  ;;  %1585 = vmatpush3.bf16.msra.mxu1 %v1606_v9  ;;  %v1648_v52 = vld [vmem:[#allocation3 + $0xa0] ss:$8 sps:$4 sm:$0xff]   ;;  %v1654_v55 = vld [vmem:[#allocation3 + $0xb0] ss:$8 sps:$4 sm:$0xff]  }
  0x3b   :  { %1399 = vmatprep.subr.bf16.mxu0 %v1607_v10  ;;  %1578 = vmatprep.subr.bf16.mxu1 %v1607_v10  ;;  %v1668_v54 = vld [vmem:[#allocation8] sm:$0xff]  }
  0x3e   :  { %1400 = vmatpush3.bf16.msra.mxu0 %v1608_v12  ;;  %1586 = vmatpush3.bf16.msra.mxu1 %v1608_v12 }
  0x3f   :  { %1401 = vmatprep.subr.bf16.mxu0 %v1609_v13  ;;  %1579 = vmatprep.subr.bf16.mxu1 %v1609_v13 }
  0x42   :  { %1402 = vmatpush3.bf16.msra.mxu0 %v1610_v14  ;;  %1587 = vmatpush3.bf16.msra.mxu1 %v1610_v14 }
  0x43   :  { %1403 = vmatprep.subr.bf16.mxu0 %v1611_v15  ;;  %1580 = vmatprep.subr.bf16.mxu1 %v1611_v15 }
  0x46   :  { %1404 = vmatpush3.bf16.msra.mxu0 %v1612_v16  ;;  %1588 = vmatpush3.bf16.msra.mxu1 %v1612_v16 }
  0x47   :  { %1525 = vmatprep.subr.bf16.mxu1 %v1661_v25 }
  0x49   :  { %486 = vmatmul.mubr.bf16.vlgmr.msra.gmra.mxu0 %v1613_v17  ;;  %582 = vmatmul.mubr.bf16.vlgmr.msra.gmra.mxu1 %v1643_v20 }
  0x4a   :  { %493 = vmatprep.mubr.bf16.mxu0 %v1616_v19  ;;  %589 = vmatprep.mubr.bf16.mxu1 %v1649_v21 }
  0x4b   :  { %1526 = vmatpush3.bf16.msra.mxu1 %v1661_v25 }
  0x4c   :  { %1527 = vmatprep.subr.bf16.mxu1 %v1662_v26 }
  0x4f   :  { %1528 = vmatpush3.bf16.msra.mxu1 %v1662_v26 }
  0x50   :  { %1529 = vmatprep.subr.bf16.mxu1 %v1663_v28 }
  0x51   :  { %494 = vmatmul.mubr.bf16.gmra.mxu0 %v1618_v22  ;;  %590 = vmatmul.mubr.bf16.gmra.mxu1 %v1651_v24 }
  0x52   :  { %501 = vmatprep.mubr.bf16.mxu0 %v1619_v23  ;;  %597 = vmatprep.mubr.bf16.mxu1 %v1655_v27 }
  0x53   :  { %1530 = vmatpush3.bf16.msra.mxu1 %v1663_v28 }
  0x54   :  { %1531 = vmatprep.subr.bf16.mxu1 %v1664_v30 }
  0x57   :  { %1532 = vmatpush3.bf16.msra.mxu1 %v1664_v30 }
  0x58   :  { %1533 = vmatprep.subr.bf16.mxu1 %v1665_v47 }
  0x59   :  { %502 = vmatmul.mubr.bf16.gmra.mxu0 %v1621_v29  ;;  %598 = vmatmul.mubr.bf16.gmra.mxu1 %v1657_v32 }
  0x5a   :  { %509 = vmatprep.mubr.bf16.mxu0 %v1622_v31  ;;  %605 = vmatprep.mubr.bf16.mxu1 %v1658_v33 }
  0x5b   :  { %1534 = vmatpush3.bf16.msra.mxu1 %v1665_v47 }
  0x5c   :  { %1535 = vmatprep.subr.bf16.mxu1 %v1666_v50 }
  0x5f   :  { %1536 = vmatpush3.bf16.msra.mxu1 %v1666_v50 }
  0x60   :  { %1537 = vmatprep.subr.bf16.mxu1 %v1667_v51 }
  0x61   :  { %510 = vmatmul.mubr.bf16.gmra.mxu0 %v1624_v34  ;;  %606 = vmatmul.mubr.bf16.gmra.mxu1 %v1660_v36 }
  0x62   :  { %517 = vmatprep.mubr.bf16.mxu0 %v1625_v35 }
  0x63   :  { %1538 = vmatpush3.bf16.msra.mxu1 %v1667_v51 }
  0x64   :  { %1539 = vmatprep.subr.bf16.mxu1 %v1668_v54 }
  0x67   :  { %1540 = vmatpush3.bf16.msra.mxu1 %v1668_v54 }
  0x69   :  { %518 = vmatmul.mubr.bf16.gmra.mxu0 %v1627_v37 }
  0x6a   :  { %525 = vmatprep.mubr.bf16.mxu0 %v1628_v38 }
  0x71   :  { %526 = vmatmul.mubr.bf16.gmra.mxu0 %v1630_v39 }
  0x72   :  { %533 = vmatprep.mubr.bf16.mxu0 %v1631_v40 }
  0x79   :  { %534 = vmatmul.mubr.bf16.gmra.mxu0 %v1633_v41 }
  0x7a   :  { %541 = vmatprep.mubr.bf16.mxu0 %v1634_v42 }
  0x81   :  { %542 = vmatmul.mubr.bf16.gmra.mxu0 %v1636_v43 }
  0x82   :  { %549 = vmatprep.mubr.bf16.mxu0 %v1637_v44 }
  0x89   :  { %550 = vmatmul.mubr.bf16.gmra.mxu0 %v1639_v45 }
  0x8a   :  { %557 = vmatprep.mubr.bf16.mxu0 %v1640_v46 }
  0x91   :  { %558 = vmatmul.mubr.bf16.gmra.mxu0 %v1642_v48 }
  0x92   :  { %565 = vmatprep.mubr.bf16.mxu0 %v1646_v49 }
  0x99   :  { %566 = vmatmul.mubr.bf16.gmra.mxu0 %v1648_v52 }
  0x9a   :  { %573 = vmatprep.mubr.bf16.mxu0 %v1652_v53 }
  0xa1   :  { %574 = vmatmul.mubr.bf16.gmra.mxu0 %v1654_v55 }
 0x109   :  { %v1405_v56 = vpop.f32.mrf.mxu0  ;;  %v1477_v31 = vpop.f32.mrf.mxu1 }
 0x10b   :  { %v1406_v57 = vpop.f32.mrf.mxu0  ;;  %v1478_v37 = vpop.f32.mrf.mxu1 }
 0x10c   :  { %v1407_v60 = vadd.f32 %v1406_v57, %v1405_v56 }
 0x10d   :  { %v1408_v58 = vpop.f32.mrf.mxu0  ;;  %v1480_v40 = vpop.f32.mrf.mxu1 }
 0x10f   :  { %v1409_v59 = vpop.f32.mrf.mxu0  ;;  %v1481_v46 = vpop.f32.mrf.mxu1 }
 0x110   :  { %v1410_v61 = vadd.f32 %v1409_v59, %v1408_v58 }
 0x111   :  { %v1411_v62 = vpop.f32.mrf.mxu0  ;;  %v1483_v49 = vpop.f32.mrf.mxu1 }
 0x112   :  { %v713_v63 = vpack.c.bf16 %v1410_v61, %v1407_v60 }
 0x113   :  { %v1412_v0 = vpop.f32.mrf.mxu0  ;;  %v1484_v55 = vpop.f32.mrf.mxu1 }
 0x114   :  { %1541 = vmatprep.mubr.bf16.mxu1 %v713_v63  ;;  %v1413_v3 = vadd.f32 %v1412_v0, %v1411_v62 }
 0x115   :  { %v1414_v1 = vpop.f32.mrf.mxu0  ;;  %v1486_v58 = vpop.f32.mrf.mxu1 }
 0x117   :  { %v1415_v2 = vpop.f32.mrf.mxu0  ;;  %v1487_v0 = vpop.f32.mrf.mxu1 }
 0x118   :  { %v1416_v4 = vadd.f32 %v1415_v2, %v1414_v1 }
 0x119   :  { %v1417_v5 = vpop.f32.mrf.mxu0 }
 0x11a   :  { %v714_v6 = vpack.c.bf16 %v1416_v4, %v1413_v3  ;;  %v1489_v3 = vpop.f32.mrf.mxu1 }
 0x11b   :  { %v1418_v7 = vpop.f32.mrf.mxu0 }
 0x11c   :  { %1542 = vmatmul.mubr.bf16.vlgmr.msra.gmra.mxu1 %v714_v6  ;;  %v1419_v10 = vadd.f32 %v1418_v7, %v1417_v5 }
 0x11d   :  { %v1420_v8 = vpop.f32.mrf.mxu0 }
 0x11f   :  { %v1421_v9 = vpop.f32.mrf.mxu0 }
 0x120   :  { %v1422_v11 = vadd.f32 %v1421_v9, %v1420_v8  ;;  %v1490_v9 = vpop.f32.mrf.mxu1 }
 0x121   :  { %v1423_v12 = vpop.f32.mrf.mxu0 }
 0x122   :  { %v715_v13 = vpack.c.bf16 %v1422_v11, %v1419_v10 }
 0x123   :  { %v1424_v14 = vpop.f32.mrf.mxu0 }
 0x124   :  { %1545 = vmatprep.mubr.bf16.mxu1 %v715_v13  ;;  %v1425_v17 = vadd.f32 %v1424_v14, %v1423_v12  ;;  %v1492_v12 = vpop.f32.mrf.mxu1 }
 0x125   :  { %v1426_v15 = vpop.f32.mrf.mxu0 }
 0x127   :  { %v1427_v16 = vpop.f32.mrf.mxu0 }
 0x128   :  { %v1428_v18 = vadd.f32 %v1427_v16, %v1426_v15 }
 0x129   :  { %v1429_v19 = vpop.f32.mrf.mxu0 }
 0x12a   :  { %v716_v20 = vpack.c.bf16 %v1428_v18, %v1425_v17  ;;  %v1493_v18 = vpop.f32.mrf.mxu1 }
 0x12b   :  { %v1430_v21 = vpop.f32.mrf.mxu0 }
 0x12c   :  { %1546 = vmatmul.mubr.bf16.gmra.mxu1 %v716_v20  ;;  %v1431_v24 = vadd.f32 %v1430_v21, %v1429_v19  ;;  %v1479_v20 = vadd.f32 %v1478_v37, %v1477_v31  ;;  %v1482_v21 = vadd.f32 %v1481_v46, %v1480_v40 }
 0x12d   :  { %v1432_v22 = vpop.f32.mrf.mxu0 }
 0x12f   :  { %v1433_v23 = vpop.f32.mrf.mxu0 }
 0x130   :  { %v1434_v25 = vadd.f32 %v1433_v23, %v1432_v22  ;;  %v1495_v23 = vpop.f32.mrf.mxu1 }
 0x131   :  { %v1435_v26 = vpop.f32.mrf.mxu0 }
 0x132   :  { %v717_v27 = vpack.c.bf16 %v1434_v25, %v1431_v24 }
 0x133   :  { %v1436_v28 = vpop.f32.mrf.mxu0 }
 0x134   :  { %1549 = vmatprep.mubr.bf16.mxu1 %v717_v27  ;;  %v1437_v32 = vadd.f32 %v1436_v28, %v1435_v26  ;;  %v725_v27 = vpack.c.bf16 %v1482_v21, %v1479_v20  ;;  %v1496_v28 = vpop.f32.mrf.mxu1 }
 0x135   :  { %v1438_v29 = vpop.f32.mrf.mxu0  ;;  %v1497_v31 = vadd.f32 %v1496_v28, %v1495_v23 }
 0x137   :  { %v1439_v30 = vpop.f32.mrf.mxu0 }
 0x138   :  { %v1440_v33 = vadd.f32 %v1439_v30, %v1438_v29  ;;  %v1485_v29 = vadd.f32 %v1484_v55, %v1483_v49  ;;  %v1488_v30 = vadd.f32 %v1487_v0, %v1486_v58 }
 0x139   :  { %v1441_v34 = vpop.f32.mrf.mxu0 }
 0x13a   :  { %v718_v35 = vpack.c.bf16 %v1440_v33, %v1437_v32  ;;  %v1491_v32 = vadd.f32 %v1490_v9, %v1489_v3  ;;  %v1494_v33 = vadd.f32 %v1493_v18, %v1492_v12 }
 0x13b   :  { %v1442_v36 = vpop.f32.mrf.mxu0 }
 0x13c   :  { %1550 = vmatmul.mubr.bf16.gmra.mxu1 %v718_v35  ;;  %v1443_v41 = vadd.f32 %v1442_v36, %v1441_v34  ;;  %v1498_v34 = vpop.f32.mrf.mxu1  ;;  %v726_v35 = vpack.c.bf16 %v1488_v30, %v1485_v29  ;;  %v727_v36 = vpack.c.bf16 %v1494_v33, %v1491_v32 }
 0x13d   :  { %v1444_v38 = vpop.f32.mrf.mxu0 }
 0x13f   :  { %v1445_v39 = vpop.f32.mrf.mxu0 }
 0x140   :  { %v1446_v42 = vadd.f32 %v1445_v39, %v1444_v38  ;;  %v1499_v38 = vpop.f32.mrf.mxu1 }
 0x141   :  { %v1447_v43 = vpop.f32.mrf.mxu0  ;;  %v1500_v37 = vadd.f32 %v1499_v38, %v1498_v34 }
 0x142   :  { %v719_v44 = vpack.c.bf16 %v1446_v42, %v1443_v41  ;;  %v1806_v41 = vld [vmem:[%s1849_s3] ss:$0 sm:$0xff]  ;;  %s1762_s3 = smov [#allocation9]  }
 0x143   :  { %v1448_v45 = vpop.f32.mrf.mxu0  ;;  %v728_v39 = vpack.c.bf16 %v1500_v37, %v1497_v31  ;;  %s1158_s7 = sshll.u32 %s1762_s3, 4  ;;  %s1159_s7 = int_to_ptr.vmem [resolvable:$true] %s1158_s7 }
 0x144   :  { %1553 = vmatprep.mubr.bf16.mxu1 %v719_v44  ;;  %v1449_v50 = vadd.f32 %v1448_v45, %v1447_v43  ;;  %s1729_s8 = scalar_lea.vmem %s1159_s7, 2048  ;;  %p1734_p2 = scmp.lt.s32.totalorder %s1159_s7, %s1159_s7 }
 0x145   :  { %v1450_v47 = vpop.f32.mrf.mxu0  ;;  %p1730_p1 = scmp.ne.s32.totalorder %s1159_s7, %s1729_s8  ;;  %p1735_p3 = scmp.lt.s32.totalorder %s1729_s8, %s1729_s8 }
 0x147   :  { %v1451_v48 = vpop.f32.mrf.mxu0  ;;  %p1736_p4 = por %p1735_p3, %p1734_p2 }
 0x148   :  { %v1452_v51 = vadd.f32 %v1451_v48, %v1450_v47 }
 0x149   :  { %v1453_v52 = vpop.f32.mrf.mxu0  ;;  %p1737_p5 = pnand %p1736_p4, %p1730_p1 }
 0x14a   :  { %v720_v53 = vpack.c.bf16 %v1452_v51, %v1449_v50 }
 0x14b   :  { %v1454_v54 = vpop.f32.mrf.mxu0 }
 0x14c   :  { %1554 = vmatmul.mubr.bf16.gmra.mxu1 %v720_v53  ;;  %v1455_v59 = vadd.f32 %v1454_v54, %v1453_v52 }
 0x14d   :  { %v1456_v56 = vpop.f32.mrf.mxu0 }
 0x14f   :  { %v1457_v57 = vpop.f32.mrf.mxu0 }
 0x150   :  { %v1458_v60 = vadd.f32 %v1457_v57, %v1456_v56 }
 0x151   :  { %v1459_v61 = vpop.f32.mrf.mxu0 }
 0x152   :  { %v721_v62 = vpack.c.bf16 %v1458_v60, %v1455_v59 }
 0x153   :  { %v1460_v63 = vpop.f32.mrf.mxu0 }
 0x154   :  { %1557 = vmatprep.mubr.bf16.mxu1 %v721_v62  ;;  %v1461_v4 = vadd.f32 %v1460_v63, %v1459_v61 }
 0x155   :  { %v1462_v1 = vpop.f32.mrf.mxu0 }
 0x157   :  { %v1463_v2 = vpop.f32.mrf.mxu0 }
 0x158   :  { %v1464_v5 = vadd.f32 %v1463_v2, %v1462_v1 }
 0x159   :  { %v1465_v6 = vpop.f32.mrf.mxu0 }
 0x15a   :  { %v722_v7 = vpack.c.bf16 %v1464_v5, %v1461_v4 }
 0x15b   :  { %v1466_v8 = vpop.f32.mrf.mxu0 }
 0x15c   :  { %1558 = vmatmul.mubr.bf16.gmra.mxu1 %v722_v7  ;;  %v1467_v13 = vadd.f32 %v1466_v8, %v1465_v6 }
 0x15d   :  { %v1468_v10 = vpop.f32.mrf.mxu0 }
 0x15f   :  { %v1469_v11 = vpop.f32.mrf.mxu0 }
 0x160   :  { %v1470_v14 = vadd.f32 %v1469_v11, %v1468_v10 }
 0x161   :  { %v1471_v15 = vpop.f32.mrf.mxu0 }
 0x162   :  { %v723_v16 = vpack.c.bf16 %v1470_v14, %v1467_v13 }
 0x163   :  { %v1472_v17 = vpop.f32.mrf.mxu0 }
 0x164   :  { %1561 = vmatprep.mubr.bf16.mxu1 %v723_v16  ;;  %v1473_v24 = vadd.f32 %v1472_v17, %v1471_v15 }
 0x165   :  { %v1474_v19 = vpop.f32.mrf.mxu0 }
 0x167   :  { %v1475_v22 = vpop.f32.mrf.mxu0 }
 0x168   :  { %v1476_v25 = vadd.f32 %v1475_v22, %v1474_v19 }
 0x16a   :  { %v724_v26 = vpack.c.bf16 %v1476_v25, %v1473_v24 }
 0x16c   :  { %1562 = vmatmul.mubr.bf16.gmra.mxu1 %v724_v26 }
 0x16d   :  { %1565 = vmatprep.mubr.bf16.mxu1 %v725_v27 }
 0x174   :  { %1566 = vmatmul.mubr.bf16.gmra.mxu1 %v726_v35 }
 0x175   :  { %1569 = vmatprep.mubr.bf16.mxu1 %v727_v36 }
 0x17c   :  { %1570 = vmatmul.mubr.bf16.gmra.mxu1 %v728_v39 }
 0x1dc   :  { %v1543_v40 = vpop.f32.mrf.mxu1 }
 0x1dd   :  { %v843_v43 = vadd.f32 %v1543_v40, %v1806_v41 }
 0x1de   :  { %v834_v42 = vpop.f32.mrf.mxu1 }
 0x1df   :  { %v835_v45 = vadd.f32 %v1806_v41, %v834_v42  ;;  %v963_v48 = vmax.f32 %v843_v43, 0.0 }
 0x1e0   :  { %v1544_v44 = vpop.f32.mrf.mxu1 }
 0x1e1   :  { %v846_v46 = vadd.f32 %v1544_v44, %v1806_v41  ;;  %v961_v51 = vmax.f32 %v835_v45, 0.0 }
 0x1e2   :  { %v837_v47 = vpop.f32.mrf.mxu1 }
 0x1e3   :  { %v964_v49 = vmax.f32 %v846_v46, 0.0  ;;  %v838_v50 = vadd.f32 %v1806_v41, %v837_v47 }
 0x1e5   :  { %v1302_v52 = vpack.c.bf16 %v964_v49, %v963_v48  ;;  %v962_v53 = vmax.f32 %v838_v50, 0.0 }
 0x1e7   :  { %1374 = vst [vmem:[#allocation9 + $0x8] sm:$0xff] %v1302_v52   ;;  %v1297_v54 = vpack.c.bf16 %v962_v53, %v961_v51 }
 0x1e9   :  { %1298 = vst [vmem:[#allocation9] sm:$0xff] %v1297_v54  }
 0x1ec   :  { %v1547_v55 = vpop.f32.mrf.mxu1 }
 0x1ed   :  { %v859_v57 = vadd.f32 %v1547_v55, %v1806_v41 }
 0x1ee   :  { %v850_v56 = vpop.f32.mrf.mxu1 }
 0x1ef   :  { %v851_v59 = vadd.f32 %v1806_v41, %v850_v56  ;;  %v967_v62 = vmax.f32 %v859_v57, 0.0 }
 0x1f0   :  { %v1548_v58 = vpop.f32.mrf.mxu1 }
 0x1f1   :  { %v862_v60 = vadd.f32 %v1548_v58, %v1806_v41  ;;  %v965_v1 = vmax.f32 %v851_v59, 0.0 }
 0x1f2   :  { %v853_v61 = vpop.f32.mrf.mxu1 }
 0x1f3   :  { %v968_v63 = vmax.f32 %v862_v60, 0.0  ;;  %v854_v0 = vadd.f32 %v1806_v41, %v853_v61 }
 0x1f5   :  { %v1312_v2 = vpack.c.bf16 %v968_v63, %v967_v62  ;;  %v966_v3 = vmax.f32 %v854_v0, 0.0 }
 0x1f7   :  { %1376 = vst [vmem:[#allocation9 + $0x18] sm:$0xff] %v1312_v2   ;;  %v1307_v4 = vpack.c.bf16 %v966_v3, %v965_v1 }
 0x1f9   :  { %1375 = vst [vmem:[#allocation9 + $0x10] sm:$0xff] %v1307_v4  }
 0x1fc   :  { %v1551_v5 = vpop.f32.mrf.mxu1 }
 0x1fd   :  { %v875_v7 = vadd.f32 %v1551_v5, %v1806_v41 }
 0x1fe   :  { %v866_v6 = vpop.f32.mrf.mxu1 }
 0x1ff   :  { %v867_v9 = vadd.f32 %v1806_v41, %v866_v6  ;;  %v971_v12 = vmax.f32 %v875_v7, 0.0 }
 0x200   :  { %v1552_v8 = vpop.f32.mrf.mxu1 }
 0x201   :  { %v878_v10 = vadd.f32 %v1552_v8, %v1806_v41  ;;  %v969_v15 = vmax.f32 %v867_v9, 0.0 }
 0x202   :  { %v869_v11 = vpop.f32.mrf.mxu1 }
 0x203   :  { %v972_v13 = vmax.f32 %v878_v10, 0.0  ;;  %v870_v14 = vadd.f32 %v1806_v41, %v869_v11 }
 0x205   :  { %v1322_v16 = vpack.c.bf16 %v972_v13, %v971_v12  ;;  %v970_v17 = vmax.f32 %v870_v14, 0.0 }
 0x207   :  { %1378 = vst [vmem:[#allocation9 + $0x28] sm:$0xff] %v1322_v16   ;;  %v1317_v18 = vpack.c.bf16 %v970_v17, %v969_v15 }
 0x209   :  { %1377 = vst [vmem:[#allocation9 + $0x20] sm:$0xff] %v1317_v18  }
 0x20c   :  { %v1555_v19 = vpop.f32.mrf.mxu1 }
 0x20d   :  { %v891_v21 = vadd.f32 %v1555_v19, %v1806_v41 }
 0x20e   :  { %v882_v20 = vpop.f32.mrf.mxu1 }
 0x20f   :  { %v883_v23 = vadd.f32 %v1806_v41, %v882_v20  ;;  %v975_v26 = vmax.f32 %v891_v21, 0.0 }
 0x210   :  { %v1556_v22 = vpop.f32.mrf.mxu1 }
 0x211   :  { %v894_v24 = vadd.f32 %v1556_v22, %v1806_v41  ;;  %v973_v29 = vmax.f32 %v883_v23, 0.0 }
 0x212   :  { %v885_v25 = vpop.f32.mrf.mxu1 }
 0x213   :  { %v976_v27 = vmax.f32 %v894_v24, 0.0  ;;  %v886_v28 = vadd.f32 %v1806_v41, %v885_v25 }
 0x215   :  { %v1332_v30 = vpack.c.bf16 %v976_v27, %v975_v26  ;;  %v974_v32 = vmax.f32 %v886_v28, 0.0 }
 0x217   :  { %1380 = vst [vmem:[#allocation9 + $0x38] sm:$0xff] %v1332_v30   ;;  %v1327_v33 = vpack.c.bf16 %v974_v32, %v973_v29 }
 0x219   :  { %1379 = vst [vmem:[#allocation9 + $0x30] sm:$0xff] %v1327_v33  }
 0x21c   :  { %v1559_v34 = vpop.f32.mrf.mxu1 }
 0x21d   :  { %v907_v36 = vadd.f32 %v1559_v34, %v1806_v41 }
 0x21e   :  { %v898_v35 = vpop.f32.mrf.mxu1 }
 0x21f   :  { %v899_v31 = vadd.f32 %v1806_v41, %v898_v35  ;;  %v979_v40 = vmax.f32 %v907_v36, 0.0 }
 0x220   :  { %v1560_v38 = vpop.f32.mrf.mxu1 }
 0x221   :  { %v910_v37 = vadd.f32 %v1560_v38, %v1806_v41  ;;  %v977_v44 = vmax.f32 %v899_v31, 0.0 }
 0x222   :  { %v901_v39 = vpop.f32.mrf.mxu1 }
 0x223   :  { %v980_v42 = vmax.f32 %v910_v37, 0.0  ;;  %v902_v43 = vadd.f32 %v1806_v41, %v901_v39 }
 0x225   :  { %v1342_v45 = vpack.c.bf16 %v980_v42, %v979_v40  ;;  %v978_v46 = vmax.f32 %v902_v43, 0.0 }
 0x227   :  { %1382 = vst [vmem:[#allocation9 + $0x48] sm:$0xff] %v1342_v45   ;;  %v1337_v47 = vpack.c.bf16 %v978_v46, %v977_v44 }
 0x229   :  { %1381 = vst [vmem:[#allocation9 + $0x40] sm:$0xff] %v1337_v47  }
 0x22c   :  { %v1563_v48 = vpop.f32.mrf.mxu1 }
 0x22d   :  { %v923_v50 = vadd.f32 %v1563_v48, %v1806_v41 }
 0x22e   :  { %v914_v49 = vpop.f32.mrf.mxu1 }
 0x22f   :  { %v915_v52 = vadd.f32 %v1806_v41, %v914_v49  ;;  %v983_v55 = vmax.f32 %v923_v50, 0.0 }
 0x230   :  { %v1564_v51 = vpop.f32.mrf.mxu1 }
 0x231   :  { %v926_v53 = vadd.f32 %v1564_v51, %v1806_v41  ;;  %v981_v59 = vmax.f32 %v915_v52, 0.0 }
 0x232   :  { %v917_v54 = vpop.f32.mrf.mxu1 }
 0x233   :  { %v984_v56 = vmax.f32 %v926_v53, 0.0  ;;  %v918_v57 = vadd.f32 %v1806_v41, %v917_v54 }
 0x234   :  { %v1567_v58 = vpop.f32.mrf.mxu1 }
 0x235   :  { %v1352_v60 = vpack.c.bf16 %v984_v56, %v983_v55  ;;  %v982_v61 = vmax.f32 %v918_v57, 0.0  ;;  %v939_v0 = vadd.f32 %v1567_v58, %v1806_v41 }
 0x236   :  { %v930_v62 = vpop.f32.mrf.mxu1 }
 0x237   :  { %1384 = vst [vmem:[#allocation9 + $0x58] sm:$0xff] %v1352_v60   ;;  %v1347_v63 = vpack.c.bf16 %v982_v61, %v981_v59  ;;  %v931_v2 = vadd.f32 %v1806_v41, %v930_v62  ;;  %v987_v5 = vmax.f32 %v939_v0, 0.0 }
 0x238   :  { %v1568_v1 = vpop.f32.mrf.mxu1 }
 0x239   :  { %1383 = vst [vmem:[#allocation9 + $0x50] sm:$0xff] %v1347_v63   ;;  %v942_v3 = vadd.f32 %v1568_v1, %v1806_v41  ;;  %v985_v9 = vmax.f32 %v931_v2, 0.0 }
 0x23a   :  { %v933_v4 = vpop.f32.mrf.mxu1 }
 0x23b   :  { %v988_v6 = vmax.f32 %v942_v3, 0.0  ;;  %v934_v7 = vadd.f32 %v1806_v41, %v933_v4 }
 0x23c   :  { %v1571_v8 = vpop.f32.mrf.mxu1 }
 0x23d   :  { %v1362_v10 = vpack.c.bf16 %v988_v6, %v987_v5  ;;  %v986_v11 = vmax.f32 %v934_v7, 0.0  ;;  %v955_v14 = vadd.f32 %v1571_v8, %v1806_v41 }
 0x23e   :  { %v946_v12 = vpop.f32.mrf.mxu1 }
 0x23f   :  { %1386 = vst [vmem:[#allocation9 + $0x68] sm:$0xff] %v1362_v10   ;;  %v1357_v13 = vpack.c.bf16 %v986_v11, %v985_v9  ;;  %v947_v16 = vadd.f32 %v1806_v41, %v946_v12  ;;  %v991_v19 = vmax.f32 %v955_v14, 0.0 }
 0x240   :  { %v1572_v15 = vpop.f32.mrf.mxu1 }
 0x241   :  { %1385 = vst [vmem:[#allocation9 + $0x60] sm:$0xff] %v1357_v13   ;;  %v958_v17 = vadd.f32 %v1572_v15, %v1806_v41  ;;  %v989_v22 = vmax.f32 %v947_v16, 0.0 }
 0x242   :  { %v949_v18 = vpop.f32.mrf.mxu1 }
 0x243   :  { %v992_v20 = vmax.f32 %v958_v17, 0.0  ;;  %v950_v21 = vadd.f32 %v1806_v41, %v949_v18 }
 0x245   :  { %v1372_v23 = vpack.c.bf16 %v992_v20, %v991_v19  ;;  %v990_v24 = vmax.f32 %v950_v21, 0.0 }
 0x247   :  { %1388 = vst [vmem:[#allocation9 + $0x78] sm:$0xff] %v1372_v23   ;;  %v1367_v25 = vpack.c.bf16 %v990_v24, %v989_v22 }
 0x249   :  { %1387 = vst [vmem:[#allocation9 + $0x70] sm:$0xff] %v1367_v25  }
 0x24a   :  { %1740 = shalt.err (!%p1737_p5)
}
 0x24b   :  { %1164 = dma.vmem_to_hbm [thread:$0]  %s1159_s7, 2048, %s1850_s4, [#allocation5], %s1756_s18, %s1756_s18, %s1757_s19  }
 0x24c   :  { %1753 = dma.done.wait [#allocation5], 2048  }
 0x24d   :  { %1754 = vsyncadd [#allocation5], 4294965248 }
 0x24e   :  { %1168 = vsyncpa [#allocation4], 1 }
 0x24f   :  { %1169 = vsyncpa [#allocation7], 1 }
 0x250   :  { %1170 = vsyncpa [#allocation5], 1 }

</bundles_post_ra>
